<compile_context>
chip_gen: v5e
topology: v5e:2x2
jax: 0.10.0
libtpu: 0.0.40
codegen_flags: <defaults>
</compile_context>

<pallas_src>
import functools

import jax
import jax.numpy as jnp
from jax.experimental import pallas as pl
from jax.experimental.pallas import tpu as pltpu

IN_DIM = 125
HID_DIM = 100
OUT_DIM = 85      # per-branch MLP output width; concat -> 170 -> fc -> 1
HID_PAD = 128     # hidden padded to a full lane width


def _round_up(x, m):
    return ((x + m - 1) // m) * m


def _cea_kernel(a0_ref, a1_ref, w1_ref, pp_ref, out_ref):
    """Fused forward for one batch tile.

    a0_ref, a1_ref : (TB, 125)  f32/bf16  activation tiles (cast to bf16)
    w1_ref         : (125, 128) bfloat16  W1 with hidden dim zero-padded
    pp_ref         : (8, 128)   float32   packed params:
                       row 0 = b1 (padded), row 1 = v0 = W2 @ wfc[:85],
                       row 2 = v1 = W2 @ wfc[85:], [3,0] = fused bias
    out_ref        : (TB, 1)    float32   sigmoid(score)
    """
    w1 = w1_ref[...]                 # (125, 128) bf16
    b1 = pp_ref[0:1, :]              # (1, 128) f32
    v0 = pp_ref[1:2, :]              # (1, 128) f32
    v1 = pp_ref[2:3, :]              # (1, 128) f32
    bias = pp_ref[3:4, 0:1]          # (1, 1)   f32

    def branch_score(a_ref, v):
        # no-op cast if the producer already stores bf16 activations
        a = a_ref[...].astype(jnp.bfloat16)                        # (TB, 125)
        h = jnp.dot(a, w1, preferred_element_type=jnp.float32) + b1
        r = jnp.maximum(h, 0.0)                                    # (TB, 128) f32
        # folded layer-2 + fc: per-example lane reduction on VPU/XLU
        return jnp.sum(r * v, axis=1, keepdims=True)               # (TB, 1)

    # One branch at a time -> only one (TB,128) f32 intermediate is live.
    score = branch_score(a0_ref, v0) + branch_score(a1_ref, v1) + bias
    out_ref[...] = jax.nn.sigmoid(score)


@functools.partial(jax.jit, static_argnames=("block_b",))
def cea_forward(arch0, arch1, params, block_b=4096):
    """arch0, arch1: (B, 125) f32/bf16 -> (B,) float32 probabilities."""
    w1, b1, w2, b2, wfc, bfc = params
    B = arch0.shape[0]

    # ---- tiny one-time parameter preprocessing (fold fc into layer 2) ----
    v0 = (w2 @ wfc[:OUT_DIM]).reshape(HID_DIM)            # (100,)
    v1 = (w2 @ wfc[OUT_DIM:]).reshape(HID_DIM)            # (100,)
    bias = b2 @ wfc[:OUT_DIM, 0] + b2 @ wfc[OUT_DIM:, 0] + bfc[0]   # scalar

    w1p = jnp.zeros((IN_DIM, HID_PAD), jnp.float32).at[:, :HID_DIM].set(w1)
    w1p = w1p.astype(jnp.bfloat16)                        # bf16 MXU operand

    pp = jnp.zeros((8, HID_PAD), jnp.float32)
    pp = pp.at[0, :HID_DIM].set(b1)
    pp = pp.at[1, :HID_DIM].set(v0)
    pp = pp.at[2, :HID_DIM].set(v1)
    pp = pp.at[3, 0].set(bias)

    # ---- tile choice -----------------------------------------------------
    # Big tiles amortize the ~0.35 us per-grid-step overhead; cap the tile
    # so the "parallel" grid has >= 2 steps (v7x has 2 TensorCores); keep a
    # sublane-aligned multiple of 8.  NO batch padding: Pallas handles the
    # ragged last block and discards out-of-bounds output rows.
    tb = max(8, min(_round_up(block_b, 8), _round_up(pl.cdiv(B, 2), 8)))
    n_blocks = pl.cdiv(B, tb)

    act_spec = pl.BlockSpec((tb, IN_DIM), lambda i: (i, 0))
    rep = lambda shape: pl.BlockSpec(shape, lambda i: (0, 0))  # replicated param

    out = pl.pallas_call(
        _cea_kernel,
        out_shape=jax.ShapeDtypeStruct((B, 1), jnp.float32),
        grid_spec=pltpu.PrefetchScalarGridSpec(
            num_scalar_prefetch=0,
            grid=(n_blocks,),
            in_specs=[
                act_spec,                       # arch0 tile
                act_spec,                       # arch1 tile
                rep((IN_DIM, HID_PAD)),         # W1 (bf16, hidden-padded)
                rep((8, HID_PAD)),              # packed f32 params
            ],
            out_specs=pl.BlockSpec((tb, 1), lambda i: (i, 0)),
        ),
        compiler_params=pltpu.CompilerParams(
            dimension_semantics=("parallel",),
            # 4096-row f32 tiles need ~12-16 MiB (input double buffers +
            # one live f32 intermediate); 32 MiB fits the v5e/v6e/v7x
            # scoped-VMEM envelopes with headroom.
            vmem_limit_bytes=32 * 1024 * 1024,
        ),
    )(arch0, arch1, w1p, pp)

    return out.reshape(-1)


def init_params(key):
    """Deterministic PyTorch-style init: U(-1/sqrt(fan_in), 1/sqrt(fan_in))."""
    def linear(key, fan_in, fan_out):
        kw, kb = jax.random.split(key)
        bound = 1.0 / jnp.sqrt(fan_in)
        w = jax.random.uniform(kw, (fan_in, fan_out), jnp.float32, -bound, bound)
        b = jax.random.uniform(kb, (fan_out,), jnp.float32, -bound, bound)
        return w, b

    k1, k2, k3 = jax.random.split(key, 3)
    w1, b1 = linear(k1, IN_DIM, HID_DIM)        # Linear(125, 100)
    w2, b2 = linear(k2, HID_DIM, OUT_DIM)       # Linear(100, 85)
    wfc, bfc = linear(k3, 2 * OUT_DIM, 1)       # fc: Linear(170, 1)
    return (w1, b1, w2, b2, wfc, bfc)


def reference_forward(arch0, arch1, params):
    """Exact f32 reference matching the PyTorch forward()."""
    w1, b1, w2, b2, wfc, bfc = params
    mlp = lambda x: jnp.maximum(x @ w1 + b1, 0.0) @ w2 + b2
    feat = jnp.concatenate([mlp(arch0), mlp(arch1)], axis=1)
    return jax.nn.sigmoid((feat @ wfc + bfc).reshape(-1))


if __name__ == "__main__":
    key = jax.random.PRNGKey(0)
    kp, ka0, ka1 = jax.random.split(key, 3)

    # Deliberately NOT a multiple of the tile size to exercise the ragged
    # last-block path (no wrapper padding).  The tile heuristic gives
    # tb=128 -> grid=(2,), so the partial-block and >=2-step paths both run.
    B = 250
    params = init_params(kp)

    # "Producer emits bf16" activations: halve the input bytes of the
    # DMA-bound kernel without a wrapper re-cast pass.
    arch0 = jax.random.normal(ka0, (B, IN_DIM), jnp.float32).astype(jnp.bfloat16)
    arch1 = jax.random.normal(ka1, (B, IN_DIM), jnp.float32).astype(jnp.bfloat16)

    prob = cea_forward(arch0, arch1, params)
    prob = jax.block_until_ready(prob)

    # Reference on the same bf16-rounded inputs, in f32 math.
    ref = reference_forward(arch0.astype(jnp.float32),
                            arch1.astype(jnp.float32), params)
    assert prob.shape == (B,)
    # bf16 MXU path + fc-fold reassociation -> relaxed tolerance vs f32 ref.
    assert jnp.allclose(prob, ref, atol=1e-2, rtol=1e-2), "mismatch vs reference"
    assert bool(jnp.all(jnp.isfinite(prob))), "non-finite output"

    print("KERNEL_OK")
</pallas_src>

<mosaic_0001>
module attributes {stable_mosaic.version = 11 : i64} {
  func.func @_cea_kernel(%arg0: i32, %arg1: memref<128x125xbf16, #tpu.memory_space<vmem>>, %arg2: memref<128x125xbf16, #tpu.memory_space<vmem>>, %arg3: memref<125x128xbf16, #tpu.memory_space<vmem>>, %arg4: memref<8x128xf32, #tpu.memory_space<vmem>>, %arg5: memref<128x1xf32, #tpu.memory_space<vmem>>) attributes {dimension_semantics = [#tpu.dimension_semantics<parallel>], iteration_bounds = array<i64: 2>, scalar_prefetch = 0 : i64, scratch_operands = 0 : i64, tpu.core_type = #tpu.core_type<tc>, window_params = [{transform_indices = @transform_0, window_bounds = array<i64: 128, 125>}, {transform_indices = @transform_1, window_bounds = array<i64: 128, 125>}, {pipeline_mode = #tpu.pipeline_mode<synchronous>, transform_indices = @transform_2, window_bounds = array<i64: 125, 128>}, {pipeline_mode = #tpu.pipeline_mode<synchronous>, transform_indices = @transform_3, window_bounds = array<i64: 8, 128>}, {transform_indices = @transform_4, window_bounds = array<i64: 128, 1>}]} {
    %c0 = arith.constant 0 : index
    %c0_0 = arith.constant 0 : index
    %0 = vector.load %arg3[%c0, %c0_0] : memref<125x128xbf16, #tpu.memory_space<vmem>>, vector<125x128xbf16>
    %c0_1 = arith.constant 0 : index
    %c0_2 = arith.constant 0 : index
    %1 = vector.load %arg4[%c0_1, %c0_2] : memref<8x128xf32, #tpu.memory_space<vmem>>, vector<1x128xf32>
    %c1 = arith.constant 1 : index
    %c0_3 = arith.constant 0 : index
    %2 = vector.load %arg4[%c1, %c0_3] : memref<8x128xf32, #tpu.memory_space<vmem>>, vector<1x128xf32>
    %c2 = arith.constant 2 : index
    %c0_4 = arith.constant 0 : index
    %3 = vector.load %arg4[%c2, %c0_4] : memref<8x128xf32, #tpu.memory_space<vmem>>, vector<1x128xf32>
    %c3 = arith.constant 3 : index
    %c0_5 = arith.constant 0 : index
    %4 = vector.load %arg4[%c3, %c0_5] : memref<8x128xf32, #tpu.memory_space<vmem>>, vector<1x1xf32>
    %c0_6 = arith.constant 0 : index
    %c0_7 = arith.constant 0 : index
    %5 = vector.load %arg1[%c0_6, %c0_7] : memref<128x125xbf16, #tpu.memory_space<vmem>>, vector<128x125xbf16>
    %cst = arith.constant dense<0.000000e+00> : vector<128x128xf32>
    %6 = tpu.matmul %5, %0, %cst {dimension_numbers = #tpu.dot_dimension_numbers<[1], [0], [0], [1], [0, 0, 1, 1], [], []>} : vector<128x125xbf16>, vector<125x128xbf16>, vector<128x128xf32> -> vector<128x128xf32>
    %7 = vector.broadcast %1 : vector<1x128xf32> to vector<128x128xf32>
    %8 = arith.addf %6, %7 : vector<128x128xf32>
    %cst_8 = arith.constant 0.000000e+00 : f32
    %9 = vector.broadcast %cst_8 : f32 to vector<128x128xf32>
    %10 = arith.maximumf %8, %9 : vector<128x128xf32>
    %11 = vector.broadcast %2 : vector<1x128xf32> to vector<128x128xf32>
    %12 = arith.mulf %10, %11 : vector<128x128xf32>
    %cst_9 = arith.constant dense<0.000000e+00> : vector<128xf32>
    %13 = vector.multi_reduction <add>, %12, %cst_9 [1] : vector<128x128xf32> to vector<128xf32>
    %14 = vector.shape_cast %13 : vector<128xf32> to vector<128x1xf32>
    %c0_10 = arith.constant 0 : index
    %c0_11 = arith.constant 0 : index
    %15 = vector.load %arg2[%c0_10, %c0_11] : memref<128x125xbf16, #tpu.memory_space<vmem>>, vector<128x125xbf16>
    %cst_12 = arith.constant dense<0.000000e+00> : vector<128x128xf32>
    %16 = tpu.matmul %15, %0, %cst_12 {dimension_numbers = #tpu.dot_dimension_numbers<[1], [0], [0], [1], [0, 0, 1, 1], [], []>} : vector<128x125xbf16>, vector<125x128xbf16>, vector<128x128xf32> -> vector<128x128xf32>
    %17 = vector.broadcast %1 : vector<1x128xf32> to vector<128x128xf32>
    %18 = arith.addf %16, %17 : vector<128x128xf32>
    %cst_13 = arith.constant 0.000000e+00 : f32
    %19 = vector.broadcast %cst_13 : f32 to vector<128x128xf32>
    %20 = arith.maximumf %18, %19 : vector<128x128xf32>
    %21 = vector.broadcast %3 : vector<1x128xf32> to vector<128x128xf32>
    %22 = arith.mulf %20, %21 : vector<128x128xf32>
    %cst_14 = arith.constant dense<0.000000e+00> : vector<128xf32>
    %23 = vector.multi_reduction <add>, %22, %cst_14 [1] : vector<128x128xf32> to vector<128xf32>
    %24 = vector.shape_cast %23 : vector<128xf32> to vector<128x1xf32>
    %25 = arith.addf %14, %24 : vector<128x1xf32>
    %26 = vector.broadcast %4 : vector<1x1xf32> to vector<128x1xf32>
    %27 = arith.addf %25, %26 : vector<128x1xf32>
    %28 = arith.negf %27 : vector<128x1xf32>
    %29 = math.exp %28 : vector<128x1xf32>
    %cst_15 = arith.constant 1.000000e+00 : f32
    %30 = vector.broadcast %cst_15 : f32 to vector<128x1xf32>
    %31 = arith.addf %30, %29 : vector<128x1xf32>
    %32 = arith.divf %30, %31 : vector<128x1xf32>
    %c0_16 = arith.constant 0 : index
    %c0_17 = arith.constant 0 : index
    %33 = vector.load %arg5[%c0_16, %c0_17] : memref<128x1xf32, #tpu.memory_space<vmem>>, vector<128x1xf32>
    tpu.vector_store %arg5[%c0_16, %c0_17], %32 {strides = array<i32>} : memref<128x1xf32, #tpu.memory_space<vmem>>, vector<128x1xf32>,
    return
  }
  func.func @transform_0(%arg0: i32) -> (i32, i32) {
    %c0_i32 = arith.constant 0 : i32
    %c0_i32_0 = arith.constant 0 : i32
    return %arg0, %c0_i32 : i32, i32
  }
  func.func @transform_1(%arg0: i32) -> (i32, i32) {
    %c0_i32 = arith.constant 0 : i32
    %c0_i32_0 = arith.constant 0 : i32
    return %arg0, %c0_i32 : i32, i32
  }
  func.func @transform_2(%arg0: i32) -> (i32, i32) {
    %c0_i32 = arith.constant 0 : i32
    %c0_i32_0 = arith.constant 0 : i32
    %c0_i32_1 = arith.constant 0 : i32
    return %c0_i32, %c0_i32_0 : i32, i32
  }
  func.func @transform_3(%arg0: i32) -> (i32, i32) {
    %c0_i32 = arith.constant 0 : i32
    %c0_i32_0 = arith.constant 0 : i32
    %c0_i32_1 = arith.constant 0 : i32
    return %c0_i32, %c0_i32_0 : i32, i32
  }
  func.func @transform_4(%arg0: i32) -> (i32, i32) {
    %c0_i32 = arith.constant 0 : i32
    %c0_i32_0 = arith.constant 0 : i32
    return %arg0, %c0_i32 : i32, i32
  }
}

</mosaic_0001>

<bundles_post_ra>
// kernel: cea_forward.1
= control target key start
LH: loop header
LB: loop body
LE: loop exit
PB: predicated region body
PF: predicated region fallthrough
CT: control target
= control target key end

     0   :  { %s1401_s15 = smov 0   ;;  %s1699_s0 = inlined_call_operand.vmem [shape: bf16[250,125], index: 0, kind: input, shape index: {}]   ;;  %s1700_s1 = inlined_call_operand.vmem [shape: bf16[250,125], index: 1, kind: input, shape index: {}]   ;;  %s1701_s2 = inlined_call_operand.vmem [shape: bf16[125,128], index: 2, kind: input, shape index: {}]   ;;  %s1702_s3 = inlined_call_operand.vmem [shape: f32[8,128], index: 3, kind: input, shape index: {}]   ;;  %s1703_s4 = inlined_call_operand.vmem [shape: f32[250,1], index: 4, kind: output, shape index: {}]  }
   0x1 LB: > { %s1109_s16 = sadd.s32 4294967295, %s1373_s15   ;;  %p1113_p0 = scmp.ge.s32.totalorder %s1373_s15, 1  ;;  %s1373_s15 = sphi %s1401_s15, %s14_s15  }
   0x2   : > { %p174_p1 = scmp.lt.s32.totalorder %s1373_s15, 3 }
   0x4   : > { %p175_p2 = pnand %p1113_p0, %p174_p1 }
   0x5   : > { %s1114_s27 = sshll.u32 (!%p175_p2), %s1109_s16, 4 }
   0x6   : > { %178 = sbr.rel (%p175_p2) target bundleno = 419 (0x1a3), region = 36  ;;  %p206_p3 = scmp.lt.s32.totalorder (!%p175_p2), %s1114_s27, 31 }
   0xb   : > { %v1182_v0 = vld [vmem:[%s1701_s2 + $0x38] sm:$0xf]  ;;  %v1257_v1 = vld [vmem:[%s1701_s2 + $0x38] sm:$0x70]  ;;  %vm372_vm0 = vcmask 1045504   ;;  %vm373_vm1 = vcmask 1046528  }
   0xc   : > { %v1183_v2 = vor.u32 %v1257_v1, %v1182_v0  ;;  %v1375_v3 = vmov 65535   ;;  %v1256_v7 = vld [vmem:[%s1701_s2 + $0x30] sm:$0xff]  ;;  %v1255_v8 = vld [vmem:[%s1701_s2 + $0x28] sm:$0xff]  ;;  %v1254_v9 = vld [vmem:[%s1701_s2 + $0x20] sm:$0xff]  ;;  %s1709_s27 = smov (!%p206_p3, %s1114_s27), 31  ;;  %vm347_vm2 = vcmask 1022976  }
   0xd   : > { %v374_v4 = vsel %vm372_vm0, 4294967295, %v1375_v3  ;;  %v1253_v10 = vld [vmem:[%s1701_s2 + $0x18] sm:$0xff]  ;;  %v1252_v11 = vld [vmem:[%s1701_s2 + $0x10] sm:$0xff]  ;;  %v1251_v12 = vld [vmem:[%s1701_s2 + $0x8] sm:$0xff]  ;;  %s1115_s8 = sshll.u32 %s1709_s27, 2  ;;  %s1119_s26 = sshll.u32 %s1709_s27, 3 }
   0xe   : > { %v375_v5 = vsel %vm373_vm1, %v374_v4, 0  ;;  %v1250_v13 = vld [vmem:[%s1701_s2] sm:$0xff]  ;;  %s1442_s13 = scalar_lea.vmem %s1699_s0, %s1115_s8  ;;  %s1447_s17 = scalar_lea.vmem %s1700_s1, %s1115_s8  ;;  %vm1024_vm5 = vcmask 7168  }
   0xf   : > { %v377_v6 = vand.u32 %v1183_v2, %v375_v5  ;;  %v1258_v14 = vld [vmem:[%s1442_s13] sm:$0xff]  ;;  %v1259_v18 = vld [vmem:[%s1442_s13 + $0x8] sm:$0xff]  ;;  %v1260_v22 = vld [vmem:[%s1442_s13 + $0x10] sm:$0xff]  ;;  %s1573_s30 = scalar_lea.vmem %s1703_s4, %s1119_s26 }
  0x10   : > { %v1262_v15 = vld [vmem:[%s1442_s13 + $0x20] sm:$0xff]  ;;  %v1263_v19 = vld [vmem:[%s1442_s13 + $0x28] sm:$0xff]  ;;  %v1264_v23 = vld [vmem:[%s1442_s13 + $0x30] sm:$0xff] }
  0x11   : > { %379 = vmatpush.bf16.msra.mxu0 %v377_v6  ;;  %1274 = vmatpush.bf16.msra.mxu2 %v377_v6  ;;  %v1266_v16 = vld [vmem:[%s1447_s17] sm:$0xff]  ;;  %v1271_v20 = vld [vmem:[%s1447_s17 + $0x28] sm:$0xff]  ;;  %v1272_v24 = vld [vmem:[%s1447_s17 + $0x30] sm:$0xff] }
  0x12   : > { %573 = vmatpush.bf16.msra.mxu1 %v377_v6  ;;  %1282 = vmatpush.bf16.msra.mxu3 %v377_v6  ;;  %v1270_v17 = vld [vmem:[%s1447_s17 + $0x20] sm:$0xff]  ;;  %v1267_v21 = vld [vmem:[%s1447_s17 + $0x8] sm:$0xff]  ;;  %v1268_v25 = vld [vmem:[%s1447_s17 + $0x10] sm:$0xff] }
  0x13   : > { %v1265_v26 = vld [vmem:[%s1442_s13 + $0x38] sm:$0xff]  ;;  %v1484_v30 = vld [vmem:[%s1702_s3] ss:$0 sm:$0xff]  ;;  %v1490_v34 = vld [vmem:[%s1702_s3 + $0x1] ss:$0 sm:$0xff] }
  0x14   : > { %v1261_v27 = vld [vmem:[%s1442_s13 + $0x18] sm:$0xff]  ;;  %v1496_v36 = vld [vmem:[%s1702_s3 + $0x2] ss:$0 sm:$0xff] }
  0x15   : > { %380 = vmatpush.bf16.msra.mxu0 %v1256_v7  ;;  %1275 = vmatpush.bf16.msra.mxu2 %v1256_v7  ;;  %v1269_v28 = vld [vmem:[%s1447_s17 + $0x18] sm:$0xff] }
  0x16   : > { %574 = vmatpush.bf16.msra.mxu1 %v1256_v7  ;;  %1283 = vmatpush.bf16.msra.mxu3 %v1256_v7  ;;  %v1273_v29 = vld [vmem:[%s1447_s17 + $0x38] sm:$0xff] }
  0x19   : > { %381 = vmatpush.bf16.msra.mxu0 %v1255_v8  ;;  %1276 = vmatpush.bf16.msra.mxu2 %v1255_v8 }
  0x1a   : > { %575 = vmatpush.bf16.msra.mxu1 %v1255_v8  ;;  %1284 = vmatpush.bf16.msra.mxu3 %v1255_v8 }
  0x1d   : > { %382 = vmatpush.bf16.msra.mxu0 %v1254_v9  ;;  %1277 = vmatpush.bf16.msra.mxu2 %v1254_v9 }
  0x1e   : > { %576 = vmatpush.bf16.msra.mxu1 %v1254_v9  ;;  %1285 = vmatpush.bf16.msra.mxu3 %v1254_v9 }
  0x21   : > { %383 = vmatpush.bf16.msra.mxu0 %v1253_v10  ;;  %1278 = vmatpush.bf16.msra.mxu2 %v1253_v10 }
  0x22   : > { %577 = vmatpush.bf16.msra.mxu1 %v1253_v10  ;;  %1286 = vmatpush.bf16.msra.mxu3 %v1253_v10 }
  0x25   : > { %384 = vmatpush.bf16.msra.mxu0 %v1252_v11  ;;  %1279 = vmatpush.bf16.msra.mxu2 %v1252_v11 }
  0x26   : > { %578 = vmatpush.bf16.msra.mxu1 %v1252_v11  ;;  %1287 = vmatpush.bf16.msra.mxu3 %v1252_v11 }
  0x29   : > { %385 = vmatpush.bf16.msra.mxu0 %v1251_v12  ;;  %1280 = vmatpush.bf16.msra.mxu2 %v1251_v12 }
  0x2a   : > { %579 = vmatpush.bf16.msra.mxu1 %v1251_v12  ;;  %1288 = vmatpush.bf16.msra.mxu3 %v1251_v12 }
  0x2d   : > { %386 = vmatpush.bf16.msra.mxu0 %v1250_v13  ;;  %1281 = vmatpush.bf16.msra.mxu2 %v1250_v13 }
  0x2e   : > { %580 = vmatpush.bf16.msra.mxu1 %v1250_v13  ;;  %1289 = vmatpush.bf16.msra.mxu3 %v1250_v13 }
  0x30   : > { %1184 = vmatmul.msk.bf16.vlgmr.msra.gmra.mxu0 %vm347_vm2, %v1258_v14  ;;  %1188 = vmatmul.msk.bf16.vlgmr.msra.gmra.mxu2 %vm347_vm2, %v1262_v15 }
  0x31   : > { %1224 = vmatmul.msk.bf16.vlgmr.msra.gmra.mxu1 %vm347_vm2, %v1266_v16  ;;  %1228 = vmatmul.msk.bf16.vlgmr.msra.gmra.mxu3 %vm347_vm2, %v1270_v17 }
  0x40   : > { %1185 = vmatmul.msk.bf16.gmra.mxu0 %vm347_vm2, %v1259_v18  ;;  %1189 = vmatmul.msk.bf16.gmra.mxu2 %vm347_vm2, %v1263_v19 }
  0x41   : > { %1229 = vmatmul.msk.bf16.gmra.mxu3 %vm347_vm2, %v1271_v20  ;;  %1225 = vmatmul.msk.bf16.gmra.mxu1 %vm347_vm2, %v1267_v21 }
  0x50   : > { %1186 = vmatmul.msk.bf16.gmra.mxu0 %vm347_vm2, %v1260_v22  ;;  %1190 = vmatmul.msk.bf16.gmra.mxu2 %vm347_vm2, %v1264_v23 }
  0x51   : > { %1230 = vmatmul.msk.bf16.gmra.mxu3 %vm347_vm2, %v1272_v24  ;;  %1226 = vmatmul.msk.bf16.gmra.mxu1 %vm347_vm2, %v1268_v25 }
  0x60   : > { %1191 = vmatmul.msk.bf16.gmra.mxu2 %vm347_vm2, %v1265_v26  ;;  %1187 = vmatmul.msk.bf16.gmra.mxu0 %vm347_vm2, %v1261_v27 }
  0x61   : > { %1227 = vmatmul.msk.bf16.gmra.mxu1 %vm347_vm2, %v1269_v28  ;;  %1231 = vmatmul.msk.bf16.gmra.mxu3 %vm347_vm2, %v1273_v29 }
  0xad   : > { %v388_v31 = vpop.f32.mrf.mxu0 }
  0xae   : > { %v389_v32 = vadd.f32 %v1484_v30, %v388_v31  ;;  %v582_v33 = vpop.f32.mrf.mxu1 }
  0xaf   : > { %v583_v35 = vadd.f32 %v1484_v30, %v582_v33 }
  0xb0   : > { %v428_v37 = vmax.f32 %v389_v32, 0.0 }
  0xb1   : > { %v622_v38 = vmax.f32 %v583_v35, 0.0 }
  0xb2   : > { %v445_v39 = vmul.f32 %v1490_v34, %v428_v37 }
  0xb3   : > { %v408_v40 = vpop.f32.mrf.mxu2  ;;  %v639_v41 = vmul.f32 %v1496_v36, %v622_v38 }
  0xb4   : > { %v409_v42 = vadd.f32 %v1484_v30, %v408_v40  ;;  %v602_v43 = vpop.f32.mrf.mxu3  ;;  %461 = vadd.xlane.f32.xlu0 %v445_v39 }
  0xb5   : > { %v603_v44 = vadd.f32 %v1484_v30, %v602_v43  ;;  %655 = vadd.xlane.f32.xlu1 %v639_v41  ;;  %v390_v45 = vpop.f32.mrf.mxu0 }
  0xb6   : > { %v436_v46 = vmax.f32 %v409_v42, 0.0  ;;  %v584_v47 = vpop.f32.mrf.mxu1  ;;  %v391_v51 = vadd.f32 %v1484_v30, %v390_v45 }
  0xb7   : > { %v630_v48 = vmax.f32 %v603_v44, 0.0  ;;  %v585_v49 = vadd.f32 %v1484_v30, %v584_v47 }
  0xb8   : > { %v453_v50 = vmul.f32 %v1490_v34, %v436_v46  ;;  %v429_v58 = vmax.f32 %v391_v51, 0.0 }
  0xb9   : > { %v647_v52 = vmul.f32 %v1496_v36, %v630_v48  ;;  %v623_v54 = vmax.f32 %v585_v49, 0.0 }
  0xba   : > { %477 = vadd.xlane.f32.xlu2 %v453_v50  ;;  %v446_v1 = vmul.f32 %v1490_v34, %v429_v58 }
  0xbb   : > { %v410_v53 = vpop.f32.mrf.mxu2  ;;  %v640_v62 = vmul.f32 %v1496_v36, %v623_v54 }
  0xbc   : > { %v604_v55 = vpop.f32.mrf.mxu3  ;;  %671 = vadd.xlane.f32.xlu0 %v647_v52  ;;  %v411_v0 = vadd.f32 %v1484_v30, %v410_v53 }
  0xbd   : > { %v605_v56 = vadd.f32 %v1484_v30, %v604_v55  ;;  %v393_v57 = vpop.f32.mrf.mxu0 }
  0xbe   : > { %v587_v59 = vpop.f32.mrf.mxu1  ;;  %v394_v61 = vadd.f32 %v1484_v30, %v393_v57  ;;  %v437_v7 = vmax.f32 %v411_v0, 0.0 }
  0xbf   : > { %v631_v60 = vmax.f32 %v605_v56, 0.0  ;;  %v588_v12 = vadd.f32 %v1484_v30, %v587_v59 }
  0xc0   : > { %v430_v2 = vmax.f32 %v394_v61, 0.0  ;;  %v454_v14 = vmul.f32 %v1490_v34, %v437_v7 }
  0xc1   : > { %v648_v63 = vmul.f32 %v1496_v36, %v631_v60  ;;  %v624_v18 = vmax.f32 %v588_v12, 0.0 }
  0xc2   : > { %657 = vadd.xlane.f32.xlu2 %v640_v62  ;;  %v447_v11 = vmul.f32 %v1490_v34, %v430_v2 }
  0xc3   : > { %673 = vadd.xlane.f32.xlu1 %v648_v63  ;;  %v413_v3 = vpop.f32.mrf.mxu2  ;;  %v641_v26 = vmul.f32 %v1496_v36, %v624_v18 }
  0xc4   : > { %v607_v4 = vpop.f32.mrf.mxu3  ;;  %463 = vadd.xlane.f32.xlu0 %v446_v1  ;;  %v414_v9 = vadd.f32 %v1484_v30, %v413_v3 }
  0xc5   : > { %v608_v5 = vadd.f32 %v1484_v30, %v607_v4  ;;  %v395_v6 = vpop.f32.mrf.mxu0 }
  0xc6   : > { %v589_v8 = vpop.f32.mrf.mxu1  ;;  %v438_v15 = vmax.f32 %v414_v9, 0.0  ;;  %v396_v27 = vadd.f32 %v1484_v30, %v395_v6 }
  0xc7   : > { %v632_v10 = vmax.f32 %v608_v5, 0.0  ;;  %v590_v42 = vadd.f32 %v1484_v30, %v589_v8 }
  0xc8   : > { %v455_v23 = vmul.f32 %v1490_v34, %v438_v15  ;;  %v431_v33 = vmax.f32 %v396_v27, 0.0 }
  0xc9   : > { %v649_v13 = vmul.f32 %v1496_v36, %v632_v10  ;;  %v625_v50 = vmax.f32 %v590_v42, 0.0 }
  0xca   : > { %v448_v43 = vmul.f32 %v1490_v34, %v431_v33 }
  0xcb   : > { %675 = vadd.xlane.f32.xlu2 %v649_v13  ;;  %465 = vadd.xlane.f32.xlu1 %v447_v11  ;;  %v415_v16 = vpop.f32.mrf.mxu2  ;;  %v642_v0 = vmul.f32 %v1496_v36, %v625_v50 }
  0xcc   : > { %v416_v17 = vadd.f32 %v1484_v30, %v415_v16  ;;  %v609_v19 = vpop.f32.mrf.mxu3  ;;  %479 = vadd.xlane.f32.xlu0 %v454_v14 }
  0xcd   : > { %v398_v20 = vpop.f32.mrf.mxu0  ;;  %v610_v28 = vadd.f32 %v1484_v30, %v609_v19 }
  0xce   : > { %v439_v21 = vmax.f32 %v416_v17, 0.0  ;;  %v592_v22 = vpop.f32.mrf.mxu1  ;;  %v399_v24 = vadd.f32 %v1484_v30, %v398_v20 }
  0xcf   : > { %v633_v37 = vmax.f32 %v610_v28, 0.0  ;;  %v593_v40 = vadd.f32 %v1484_v30, %v592_v22 }
  0xd0   : > { %v456_v25 = vmul.f32 %v1490_v34, %v439_v21  ;;  %v432_v29 = vmax.f32 %v399_v24, 0.0 }
  0xd1   : > { %v650_v44 = vmul.f32 %v1496_v36, %v633_v37  ;;  %v626_v45 = vmax.f32 %v593_v40, 0.0 }
  0xd2   : > { %v449_v39 = vmul.f32 %v1490_v34, %v432_v29 }
  0xd3   : > { %483 = vadd.xlane.f32.xlu2 %v456_v25  ;;  %481 = vadd.xlane.f32.xlu1 %v455_v23  ;;  %v418_v31 = vpop.f32.mrf.mxu2  ;;  %v643_v57 = vmul.f32 %v1496_v36, %v626_v45 }
  0xd4   : > { %659 = vadd.xlane.f32.xlu0 %v641_v26  ;;  %v612_v32 = vpop.f32.mrf.mxu3  ;;  %v419_v41 = vadd.f32 %v1484_v30, %v418_v31 }
  0xd5   : > { %v400_v35 = vpop.f32.mrf.mxu0  ;;  %v613_v56 = vadd.f32 %v1484_v30, %v612_v32 }
  0xd6   : > { %v594_v38 = vpop.f32.mrf.mxu1  ;;  %v440_v47 = vmax.f32 %v419_v41, 0.0  ;;  %v401_v63 = vadd.f32 %v1484_v30, %v400_v35 }
  0xd7   : > { %v595_v3 = vadd.f32 %v1484_v30, %v594_v38  ;;  %v634_v5 = vmax.f32 %v613_v56, 0.0 }
  0xd8   : > { %v457_v60 = vmul.f32 %v1490_v34, %v440_v47  ;;  %v433_v10 = vmax.f32 %v401_v63, 0.0 }
  0xd9   : > { %v627_v13 = vmax.f32 %v595_v3, 0.0  ;;  %v651_v17 = vmul.f32 %v1496_v36, %v634_v5 }
  0xda   : > { %v450_v22 = vmul.f32 %v1490_v34, %v433_v10 }
  0xdb   : > { %469 = vadd.xlane.f32.xlu2 %v449_v39  ;;  %467 = vadd.xlane.f32.xlu1 %v448_v43  ;;  %v420_v46 = vpop.f32.mrf.mxu2  ;;  %v644_v25 = vmul.f32 %v1496_v36, %v627_v13 }
  0xdc   : > { %677 = vadd.xlane.f32.xlu0 %v650_v44  ;;  %v421_v48 = vadd.f32 %v1484_v30, %v420_v46  ;;  %v614_v49 = vpop.f32.mrf.mxu3 }
  0xdd   : > { %v615_v51 = vadd.f32 %v1484_v30, %v614_v49  ;;  %v403_v52 = vpop.f32.mrf.mxu0 }
  0xde   : > { %v441_v53 = vmax.f32 %v421_v48, 0.0  ;;  %v404_v54 = vadd.f32 %v1484_v30, %v403_v52  ;;  %v597_v55 = vpop.f32.mrf.mxu1 }
  0xdf   : > { %v635_v58 = vmax.f32 %v615_v51, 0.0  ;;  %v598_v59 = vadd.f32 %v1484_v30, %v597_v55 }
  0xe0   : > { %v434_v61 = vmax.f32 %v404_v54, 0.0  ;;  %v458_v62 = vmul.f32 %v1490_v34, %v441_v53 }
  0xe1   : > { %v628_v1 = vmax.f32 %v598_v59, 0.0  ;;  %v652_v2 = vmul.f32 %v1496_v36, %v635_v58 }
  0xe2   : > { %v451_v4 = vmul.f32 %v1490_v34, %v434_v61 }
  0xe3   : > { %663 = vadd.xlane.f32.xlu2 %v643_v57  ;;  %661 = vadd.xlane.f32.xlu1 %v642_v0  ;;  %v423_v6 = vpop.f32.mrf.mxu2  ;;  %v645_v7 = vmul.f32 %v1496_v36, %v628_v1 }
  0xe4   : > { %485 = vadd.xlane.f32.xlu0 %v457_v60  ;;  %v424_v8 = vadd.f32 %v1484_v30, %v423_v6  ;;  %v617_v9 = vpop.f32.mrf.mxu3 }
  0xe5   : > { %v405_v11 = vpop.f32.mrf.mxu0  ;;  %v618_v12 = vadd.f32 %v1484_v30, %v617_v9 }
  0xe6   : > { %v442_v14 = vmax.f32 %v424_v8, 0.0  ;;  %v406_v15 = vadd.f32 %v1484_v30, %v405_v11  ;;  %v599_v16 = vpop.f32.mrf.mxu1 }
  0xe7   : > { %v600_v18 = vadd.f32 %v1484_v30, %v599_v16  ;;  %v636_v19 = vmax.f32 %v618_v12, 0.0 }
  0xe8   : > { %v459_v20 = vmul.f32 %v1490_v34, %v442_v14  ;;  %v435_v21 = vmax.f32 %v406_v15, 0.0 }
  0xe9   : > { %v629_v23 = vmax.f32 %v600_v18, 0.0  ;;  %v653_v24 = vmul.f32 %v1496_v36, %v636_v19 }
  0xea   : > { %v452_v26 = vmul.f32 %v1490_v34, %v435_v21 }
  0xeb   : > { %471 = vadd.xlane.f32.xlu2 %v450_v22  ;;  %679 = vadd.xlane.f32.xlu1 %v651_v17  ;;  %v425_v27 = vpop.f32.mrf.mxu2  ;;  %v646_v28 = vmul.f32 %v1496_v36, %v629_v23 }
  0xec   : > { %665 = vadd.xlane.f32.xlu0 %v644_v25  ;;  %v426_v29 = vadd.f32 %v1484_v30, %v425_v27  ;;  %v619_v31 = vpop.f32.mrf.mxu3 }
  0xed   : > { %v620_v32 = vadd.f32 %v1484_v30, %v619_v31  ;;  %v1563_v30 = vld [vmem:[%s1702_s3 + $0x3] ss:$0 sm:$0xff] }
  0xee   : > { %v443_v33 = vmax.f32 %v426_v29, 0.0 }
  0xef   : > { %v637_v35 = vmax.f32 %v620_v32, 0.0 }
  0xf0   : > { %v460_v37 = vmul.f32 %v1490_v34, %v443_v33 }
  0xf1   : > { %v654_v38 = vmul.f32 %v1496_v36, %v637_v35 }
  0xf3   : > { %489 = vadd.xlane.f32.xlu2 %v459_v20  ;;  %487 = vadd.xlane.f32.xlu1 %v458_v62 }
  0xf4   : > { %473 = vadd.xlane.f32.xlu0 %v451_v4 }
  0xfb   : > { %669 = vadd.xlane.f32.xlu2 %v646_v28  ;;  %667 = vadd.xlane.f32.xlu1 %v645_v7 }
  0xfc   : > { %491 = vadd.xlane.f32.xlu0 %v460_v37 }
 0x103   : > { %681 = vadd.xlane.f32.xlu2 %v652_v2  ;;  %475 = vadd.xlane.f32.xlu1 %v452_v26 }
 0x104   : > { %683 = vadd.xlane.f32.xlu0 %v653_v24 }
 0x10b   : > { %685 = vadd.xlane.f32.xlu1 %v654_v38 }
 0x127   : > { %v462_v39 = vpop.xlane.xlu0 %461 }
 0x128   : > { %v656_v40 = vpop.xlane.xlu1 %655 }
 0x129   : > { %v687_v34 = vadd.f32 %v656_v40, %v462_v39 }
 0x12b   : > { %v704_v36 = vadd.f32 %v1563_v30, %v687_v34 }
 0x12d   : > { %v1232_v41 = vmul.f32 -1.442695, %v704_v36  ;;  %v478_v42 = vpop.xlane.xlu2 %477 }
 0x12f   : > { %1303 = vpow2.f32 %v1232_v41  ;;  %v672_v43 = vpop.xlane.xlu0 %671 }
 0x130   : > { %v695_v44 = vadd.f32 %v672_v43, %v478_v42 }
 0x132   : > { %v712_v45 = vadd.f32 %v1563_v30, %v695_v44 }
 0x134   : > { %v1240_v46 = vmul.f32 -1.442695, %v712_v45 }
 0x135   : > { %v1304_v47 = vpop.eup %1303  ;;  %v658_v48 = vpop.xlane.xlu2 %657 }
 0x136   : > { %v768_v49 = vadd.f32 1.0, %v1304_v47  ;;  %1305 = vpow2.f32 %v1240_v46  ;;  %v674_v50 = vpop.xlane.xlu1 %673 }
 0x137   : > { %v464_v51 = vpop.xlane.xlu0 %463 }
 0x138   : > { %1307 = vrcp.f32 %v768_v49  ;;  %v688_v52 = vadd.f32 %v658_v48, %v464_v51  ;;  %v795_v0 = vand.u32 2147483648, %v768_v49  ;;  %vm789_vm3 = vweird.f32 %v768_v49 }
 0x139   : > { %v793_v3 = vand.u32 2147483647, %v768_v49 }
 0x13a   : > { %v705_v53 = vadd.f32 %v1563_v30, %v688_v52  ;;  %v796_v8 = vor.u32 1.1754944e-38, %v795_v0 }
 0x13b   : > { %vm794_vm7 = vcmp.eq.f32.partialorder %v793_v3, 8.507059e+37 }
 0x13c   : > { %v1306_v54 = vpop.eup %1305  ;;  %v1233_v56 = vmul.f32 -1.442695, %v705_v53 }
 0x13d   : > { %v776_v55 = vadd.f32 1.0, %v1306_v54 }
 0x13e   : > { %v1308_v57 = vpop.eup %1307  ;;  %v676_v58 = vpop.xlane.xlu2 %675 }
 0x13f   : > { %v466_v59 = vpop.xlane.xlu1 %465  ;;  %v785_v60 = vmul.f32 %v1308_v57, %v768_v49  ;;  %1309 = vrcp.f32 %v776_v55  ;;  %v480_v61 = vpop.xlane.xlu0 %479  ;;  %vm790_vm4 = vweird.f32 %v1308_v57  ;;  %v913_v19 = vand.u32 2147483647, %v776_v55 }
 0x140   : > { %1311 = vpow2.f32 %v1233_v56  ;;  %v696_v62 = vadd.f32 %v674_v50, %v480_v61  ;;  %vm791_vm6 = vmor %vm789_vm3, %vm790_vm4  ;;  %v915_v20 = vand.u32 2147483648, %v776_v55  ;;  %vm909_vm9 = vweird.f32 %v776_v55 }
 0x141   : > { %v786_v63 = vsub.f32 1.0, %v785_v60  ;;  %vm914_vm11 = vcmp.eq.f32.partialorder %v913_v19, 8.507059e+37 }
 0x142   : > { %v713_v1 = vadd.f32 %v1563_v30, %v696_v62  ;;  %v916_v28 = vor.u32 1.1754944e-38, %v915_v20 }
 0x143   : > { %v787_v2 = vmul.f32 %v1308_v57, %v786_v63 }
 0x144   : > { %v1241_v4 = vmul.f32 -1.442695, %v713_v1 }
 0x145   : > { %v1310_v5 = vpop.eup %1309  ;;  %v788_v6 = vadd.f32 %v1308_v57, %v787_v2 }
 0x146   : > { %v1312_v7 = vpop.eup %1311  ;;  %v905_v9 = vmul.f32 %v1310_v5, %v776_v55  ;;  %1313 = vpow2.f32 %v1241_v4  ;;  %v484_v10 = vpop.xlane.xlu2 %483  ;;  %vm910_vm8 = vweird.f32 %v1310_v5 }
 0x147   : > { %v482_v11 = vpop.xlane.xlu1 %481  ;;  %v792_v12 = vsel %vm791_vm6, %v1308_v57, %v788_v6  ;;  %v769_v13 = vadd.f32 1.0, %v1312_v7  ;;  %v660_v15 = vpop.xlane.xlu0 %659  ;;  %vm911_vm10 = vmor %vm909_vm9, %vm910_vm8 }
 0x148   : > { %v697_v14 = vadd.f32 %v676_v58, %v482_v11  ;;  %v797_v16 = vsel %vm794_vm7, %v796_v8, %v792_v12  ;;  %v906_v17 = vsub.f32 1.0, %v905_v9  ;;  %v689_v18 = vadd.f32 %v660_v15, %v466_v59 }
 0x149   : > { %1025 = vst.msk [vmem:[%s1573_s30] sm:$0xff] %vm1024_vm5, %v797_v16  ;;  %1315 = vrcp.f32 %v769_v13  ;;  %v808_v36 = vand.u32 2147483647, %v769_v13  ;;  %v810_v41 = vand.u32 2147483648, %v769_v13  ;;  %vm804_vm13 = vweird.f32 %v769_v13 }
 0x14a   : > { %v907_v21 = vmul.f32 %v1310_v5, %v906_v17  ;;  %v714_v22 = vadd.f32 %v1563_v30, %v697_v14  ;;  %v706_v23 = vadd.f32 %v1563_v30, %v689_v18 }
 0x14b   : > { %vm809_vm15 = vcmp.eq.f32.partialorder %v808_v36, 8.507059e+37  ;;  %v811_v53 = vor.u32 1.1754944e-38, %v810_v41 }
 0x14c   : > { %v1314_v24 = vpop.eup %1313  ;;  %v908_v25 = vadd.f32 %v1310_v5, %v907_v21  ;;  %v1242_v26 = vmul.f32 -1.442695, %v714_v22  ;;  %v1234_v27 = vmul.f32 -1.442695, %v706_v23 }
 0x14d   : > { %v777_v29 = vadd.f32 1.0, %v1314_v24 }
 0x14e   : > { %v912_v31 = vsel %vm911_vm10, %v1310_v5, %v908_v25  ;;  %1317 = vpow2.f32 %v1242_v26  ;;  %v470_v32 = vpop.xlane.xlu2 %469 }
 0x14f   : > { %v468_v33 = vpop.xlane.xlu1 %467  ;;  %v1316_v35 = vpop.eup %1315  ;;  %v917_v37 = vsel %vm914_vm11, %v916_v28, %v912_v31  ;;  %1319 = vrcp.f32 %v777_v29  ;;  %v930_v59 = vand.u32 2147483648, %v777_v29  ;;  %v928_v62 = vand.u32 2147483647, %v777_v29 }
 0x150   : > { %v678_v38 = vpop.xlane.xlu0 %677  ;;  %1033 = vst.msk [vmem:[%s1573_s30 + $0x40] sm:$0xff] %vm1024_vm5, %v917_v37  ;;  %v800_v39 = vmul.f32 %v1316_v35, %v769_v13  ;;  %1321 = vpow2.f32 %v1234_v27  ;;  %vm805_vm12 = vweird.f32 %v1316_v35  ;;  %vm924_vm1 = vweird.f32 %v777_v29 }
 0x151   : > { %v698_v40 = vadd.f32 %v678_v38, %v484_v10  ;;  %vm806_vm14 = vmor %vm804_vm13, %vm805_vm12  ;;  %v931_v3 = vor.u32 1.1754944e-38, %v930_v59  ;;  %vm929_vm3 = vcmp.eq.f32.partialorder %v928_v62, 8.507059e+37 }
 0x152   : > { %v801_v34 = vsub.f32 1.0, %v800_v39 }
 0x153   : > { %v715_v42 = vadd.f32 %v1563_v30, %v698_v40 }
 0x154   : > { %v1318_v43 = vpop.eup %1317  ;;  %v802_v44 = vmul.f32 %v1316_v35, %v801_v34 }
 0x155   : > { %v1320_v45 = vpop.eup %1319  ;;  %v1582_v46 = vadd.f32 1.0, %v1318_v43  ;;  %v1243_v47 = vmul.f32 -1.442695, %v715_v42 }
 0x156   : > { %v1322_v48 = vpop.eup %1321  ;;  %v803_v49 = vadd.f32 %v1316_v35, %v802_v44  ;;  %v920_v50 = vmul.f32 %v1320_v45, %v777_v29  ;;  %v664_v51 = vpop.xlane.xlu2 %663  ;;  %vm925_vm0 = vweird.f32 %v1320_v45 }
 0x157   : > { %v662_v52 = vpop.xlane.xlu1 %661  ;;  %1323 = vrcp.f32 %v1582_v46  ;;  %v1585_v57 = vadd.f32 1.0, %v1322_v48  ;;  %v691_v60 = vadd.f32 %v664_v51, %v470_v32  ;;  %vm926_vm2 = vmor %vm924_vm1, %vm925_vm0  ;;  %v945_v17 = vand.u32 2147483648, %v1582_v46 }
 0x158   : > { %v486_v54 = vpop.xlane.xlu0 %485  ;;  %v807_v55 = vsel %vm806_vm14, %v1316_v35, %v803_v49  ;;  %v921_v56 = vsub.f32 1.0, %v920_v50  ;;  %1325 = vpow2.f32 %v1243_v47  ;;  %v690_v0 = vadd.f32 %v662_v52, %v468_v33 }
 0x159   : > { %v812_v58 = vsel %vm809_vm15, %v811_v53, %v807_v55  ;;  %1327 = vrcp.f32 %v1585_v57  ;;  %v708_v63 = vadd.f32 %v1563_v30, %v691_v60  ;;  %v943_v22 = vand.u32 2147483647, %v1582_v46 }
 0x15a   : > { %1026 = vst.msk [vmem:[%s1573_s30 + $0x8] sm:$0xff] %vm1024_vm5, %v812_v58  ;;  %v922_v61 = vmul.f32 %v1320_v45, %v921_v56  ;;  %v707_v5 = vadd.f32 %v1563_v30, %v690_v0  ;;  %vm939_vm6 = vweird.f32 %v1582_v46  ;;  %v946_v27 = vor.u32 1.1754944e-38, %v945_v17 }
 0x15b   : > { %v1236_v4 = vmul.f32 -1.442695, %v708_v63  ;;  %v825_v28 = vand.u32 2147483648, %v1585_v57  ;;  %v823_v32 = vand.u32 2147483647, %v1585_v57  ;;  %vm944_vm9 = vcmp.eq.f32.partialorder %v943_v22, 8.507059e+37 }
 0x15c   : > { %v923_v1 = vadd.f32 %v1320_v45, %v922_v61  ;;  %v1235_v13 = vmul.f32 -1.442695, %v707_v5  ;;  %vm819_vm10 = vweird.f32 %v1585_v57 }
 0x15d   : > { %v1324_v2 = vpop.eup %1323  ;;  %1329 = vpow2.f32 %v1236_v4  ;;  %v826_v44 = vor.u32 1.1754944e-38, %v825_v28  ;;  %vm824_vm12 = vcmp.eq.f32.partialorder %v823_v32, 8.507059e+37 }
 0x15e   : > { %v1326_v6 = vpop.eup %1325  ;;  %v927_v7 = vsel %vm926_vm2, %v1320_v45, %v923_v1  ;;  %v935_v8 = vmul.f32 %v1324_v2, %v1582_v46  ;;  %v472_v9 = vpop.xlane.xlu2 %471  ;;  %vm940_vm4 = vweird.f32 %v1324_v2 }
 0x15f   : > { %v680_v10 = vpop.xlane.xlu1 %679  ;;  %v932_v11 = vsel %vm929_vm3, %v931_v3, %v927_v7  ;;  %v1593_v12 = vadd.f32 1.0, %v1326_v6  ;;  %v1328_v15 = vpop.eup %1327  ;;  %vm941_vm7 = vmor %vm939_vm6, %vm940_vm4 }
 0x160   : > { %v666_v14 = vpop.xlane.xlu0 %665  ;;  %1034 = vst.msk [vmem:[%s1573_s30 + $0x48] sm:$0xff] %vm1024_vm5, %v932_v11  ;;  %v936_v16 = vsub.f32 1.0, %v935_v8  ;;  %v699_v18 = vadd.f32 %v680_v10, %v486_v54  ;;  %v815_v20 = vmul.f32 %v1328_v15, %v1585_v57  ;;  %vm820_vm8 = vweird.f32 %v1328_v15 }
 0x161   : > { %v692_v19 = vadd.f32 %v666_v14, %v472_v9  ;;  %1331 = vrcp.f32 %v1593_v12  ;;  %vm821_vm11 = vmor %vm819_vm10, %vm820_vm8  ;;  %v958_v50 = vand.u32 2147483647, %v1593_v12  ;;  %v960_v51 = vand.u32 2147483648, %v1593_v12 }
 0x162   : > { %v937_v21 = vmul.f32 %v1324_v2, %v936_v16  ;;  %1333 = vpow2.f32 %v1235_v13  ;;  %v816_v23 = vsub.f32 1.0, %v815_v20  ;;  %v716_v24 = vadd.f32 %v1563_v30, %v699_v18 }
 0x163   : > { %v709_v25 = vadd.f32 %v1563_v30, %v692_v19  ;;  %v1330_v29 = vpop.eup %1329  ;;  %vm954_vm14 = vweird.f32 %v1593_v12  ;;  %vm959_vm0 = vcmp.eq.f32.partialorder %v958_v50, 8.507059e+37  ;;  %v961_v59 = vor.u32 1.1754944e-38, %v960_v51 }
 0x164   : > { %v938_v26 = vadd.f32 %v1324_v2, %v937_v21  ;;  %v817_v31 = vmul.f32 %v1328_v15, %v816_v23  ;;  %v1244_v33 = vmul.f32 -1.442695, %v716_v24  ;;  %v1606_v37 = vadd.f32 1.0, %v1330_v29 }
 0x165   : > { %v1237_v38 = vmul.f32 -1.442695, %v709_v25 }
 0x166   : > { %v942_v35 = vsel %vm941_vm7, %v1324_v2, %v938_v26  ;;  %v1608_v39 = vpop.xlane.xlu2 %489  ;;  %v818_v41 = vadd.f32 %v1328_v15, %v817_v31  ;;  %1335 = vpow2.f32 %v1244_v33  ;;  %v853_v1 = vand.u32 2147483647, %v1606_v37 }
 0x167   : > { %v1610_v40 = vpop.xlane.xlu1 %487  ;;  %v1332_v34 = vpop.eup %1331  ;;  %v947_v36 = vsel %vm944_vm9, %v946_v27, %v942_v35  ;;  %1337 = vrcp.f32 %v1606_v37  ;;  %v855_v2 = vand.u32 2147483648, %v1606_v37  ;;  %vm849_vm2 = vweird.f32 %v1606_v37 }
 0x168   : > { %v474_v42 = vpop.xlane.xlu0 %473  ;;  %v1334_v43 = vpop.eup %1333  ;;  %1035 = vst.msk [vmem:[%s1573_s30 + $0x50] sm:$0xff] %vm1024_vm5, %v947_v36  ;;  %v950_v45 = vmul.f32 %v1332_v34, %v1593_v12  ;;  %v822_v46 = vsel %vm821_vm11, %v1328_v15, %v818_v41  ;;  %1339 = vpow2.f32 %v1237_v38  ;;  %vm955_vm13 = vweird.f32 %v1332_v34 }
 0x169   : > { %v1618_v47 = vadd.f32 1.0, %v1334_v43  ;;  %v827_v48 = vsel %vm824_vm12, %v826_v44, %v822_v46  ;;  %vm956_vm15 = vmor %vm954_vm14, %vm955_vm13  ;;  %vm1644_vm3 = vcmp.eq.f32.partialorder %v853_v1, 8.507059e+37  ;;  %v856_v16 = vor.u32 1.1754944e-38, %v855_v2 }
 0x16a   : > { %v951_v49 = vsub.f32 1.0, %v950_v45  ;;  %1027 = vst.msk [vmem:[%s1573_s30 + $0x10] sm:$0xff] %vm1024_vm5, %v827_v48 }
 0x16b   : > { %1341 = vrcp.f32 %v1618_v47  ;;  %v838_v6 = vand.u32 2147483647, %v1618_v47  ;;  %v840_v9 = vand.u32 2147483648, %v1618_v47  ;;  %vm834_vm4 = vweird.f32 %v1618_v47 }
 0x16c   : > { %v952_v52 = vmul.f32 %v1332_v34, %v951_v49  ;;  %v1336_v53 = vpop.eup %1335 }
 0x16d   : > { %v1338_v54 = vpop.eup %1337  ;;  %v1626_v56 = vadd.f32 1.0, %v1336_v53  ;;  %vm1649_vm6 = vcmp.eq.f32.partialorder %v838_v6, 8.507059e+37  ;;  %v841_v20 = vor.u32 1.1754944e-38, %v840_v9 }
 0x16e   : > { %v953_v55 = vadd.f32 %v1332_v34, %v952_v52  ;;  %v670_v57 = vpop.xlane.xlu2 %669  ;;  %v845_v60 = vmul.f32 %v1338_v54, %v1606_v37  ;;  %v1340_v63 = vpop.eup %1339  ;;  %vm850_vm1 = vweird.f32 %v1338_v54 }
 0x16f   : > { %v668_v58 = vpop.xlane.xlu1 %667  ;;  %1343 = vrcp.f32 %v1626_v56  ;;  %v1635_v7 = vadd.f32 1.0, %v1340_v63  ;;  %vm851_vm7 = vmor %vm849_vm2, %vm850_vm1  ;;  %v975_v25 = vand.u32 2147483648, %v1626_v56  ;;  %vm969_vm10 = vweird.f32 %v1626_v56 }
 0x170   : > { %v693_v61 = vadd.f32 %v668_v58, %v474_v42  ;;  %v1629_v62 = vpop.xlane.xlu0 %491  ;;  %v957_v0 = vsel %vm956_vm15, %v1332_v34, %v953_v55  ;;  %v846_v5 = vsub.f32 1.0, %v845_v60  ;;  %v973_v37 = vand.u32 2147483647, %v1626_v56 }
 0x171   : > { %v1342_v3 = vpop.eup %1341  ;;  %v962_v4 = vsel %vm959_vm0, %v961_v59, %v957_v0  ;;  %1345 = vrcp.f32 %v1635_v7  ;;  %v976_v45 = vor.u32 1.1754944e-38, %v975_v25  ;;  %v868_v53 = vand.u32 2147483647, %v1635_v7 }
 0x172   : > { %1036 = vst.msk [vmem:[%s1573_s30 + $0x58] sm:$0xff] %vm1024_vm5, %v962_v4  ;;  %v830_v8 = vmul.f32 %v1342_v3, %v1618_v47  ;;  %v710_v10 = vadd.f32 %v1563_v30, %v693_v61  ;;  %v847_v11 = vmul.f32 %v1338_v54, %v846_v5  ;;  %vm835_vm8 = vweird.f32 %v1342_v3 }
 0x173   : > { %vm836_vm9 = vmor %vm834_vm4, %vm835_vm8  ;;  %v870_v47 = vand.u32 2147483648, %v1635_v7  ;;  %vm974_vm14 = vcmp.eq.f32.partialorder %v973_v37, 8.507059e+37  ;;  %vm864_vm15 = vweird.f32 %v1635_v7  ;;  %vm869_vm1 = vcmp.eq.f32.partialorder %v868_v53, 8.507059e+37 }
 0x174   : > { %v831_v13 = vsub.f32 1.0, %v830_v8  ;;  %v1238_v14 = vmul.f32 -1.442695, %v710_v10  ;;  %v848_v15 = vadd.f32 %v1338_v54, %v847_v11 }
 0x175   : > { %v1344_v18 = vpop.eup %1343 }
 0x176   : > { %v832_v19 = vmul.f32 %v1342_v3, %v831_v13  ;;  %1347 = vpow2.f32 %v1238_v14  ;;  %v682_v21 = vpop.xlane.xlu2 %681  ;;  %v852_v23 = vsel %vm851_vm7, %v1338_v54, %v848_v15  ;;  %v965_v24 = vmul.f32 %v1344_v18, %v1626_v56 }
 0x177   : > { %v476_v22 = vpop.xlane.xlu1 %475  ;;  %v700_v26 = vadd.f32 %v682_v21, %v1610_v40  ;;  %v857_v28 = vsel %vm1644_vm3, %v856_v16, %v852_v23  ;;  %v1346_v33 = vpop.eup %1345  ;;  %vm970_vm11 = vweird.f32 %v1344_v18  ;;  %v871_v56 = vor.u32 1.1754944e-38, %v870_v47 }
 0x178   : > { %v684_v27 = vpop.xlane.xlu0 %683  ;;  %v833_v29 = vadd.f32 %v1342_v3, %v832_v19  ;;  %v694_v31 = vadd.f32 %v670_v57, %v476_v22  ;;  %1029 = vst.msk [vmem:[%s1573_s30 + $0x20] sm:$0xff] %vm1024_vm5, %v857_v28  ;;  %v966_v35 = vsub.f32 1.0, %v965_v24  ;;  %v860_v34 = vmul.f32 %v1346_v33, %v1635_v7  ;;  %vm971_vm12 = vmor %vm969_vm10, %vm970_vm11 }
 0x179   : > { %v701_v32 = vadd.f32 %v684_v27, %v1608_v39  ;;  %v717_v38 = vadd.f32 %v1563_v30, %v700_v26  ;;  %vm865_vm13 = vweird.f32 %v1346_v33 }
 0x17a   : > { %v837_v40 = vsel %vm836_vm9, %v1342_v3, %v833_v29  ;;  %v711_v39 = vadd.f32 %v1563_v30, %v694_v31  ;;  %v967_v41 = vmul.f32 %v1344_v18, %v966_v35  ;;  %v861_v46 = vsub.f32 1.0, %v860_v34  ;;  %vm866_vm0 = vmor %vm864_vm15, %vm865_vm13 }
 0x17b   : > { %v842_v36 = vsel %vm1649_vm6, %v841_v20, %v837_v40  ;;  %v1245_v42 = vmul.f32 -1.442695, %v717_v38  ;;  %v718_v43 = vadd.f32 %v1563_v30, %v701_v32 }
 0x17c   : > { %v1348_v44 = vpop.eup %1347  ;;  %1028 = vst.msk [vmem:[%s1573_s30 + $0x18] sm:$0xff] %vm1024_vm5, %v842_v36  ;;  %v1239_v48 = vmul.f32 -1.442695, %v711_v39  ;;  %v968_v49 = vadd.f32 %v1344_v18, %v967_v41  ;;  %v862_v52 = vmul.f32 %v1346_v33, %v861_v46 }
 0x17d   : > { %v774_v50 = vadd.f32 1.0, %v1348_v44  ;;  %1349 = vpow2.f32 %v1245_v42  ;;  %v1246_v51 = vmul.f32 -1.442695, %v718_v43 }
 0x17e   : > { %1351 = vpow2.f32 %v1239_v48  ;;  %v972_v55 = vsel %vm971_vm12, %v1344_v18, %v968_v49  ;;  %v863_v58 = vadd.f32 %v1346_v33, %v862_v52 }
 0x17f   : > { %v686_v54 = vpop.xlane.xlu1 %685  ;;  %1353 = vrcp.f32 %v774_v50  ;;  %v977_v57 = vsel %vm974_vm14, %v976_v45, %v972_v55  ;;  %v883_v11 = vand.u32 2147483647, %v774_v50  ;;  %vm879_vm3 = vweird.f32 %v774_v50 }
 0x180   : > { %1355 = vpow2.f32 %v1246_v51  ;;  %1037 = vst.msk [vmem:[%s1573_s30 + $0x60] sm:$0xff] %vm1024_vm5, %v977_v57  ;;  %v702_v59 = vadd.f32 %v686_v54, %v1629_v62  ;;  %v867_v60 = vsel %vm866_vm0, %v1346_v33, %v863_v58  ;;  %v885_v62 = vand.u32 2147483648, %v774_v50 }
 0x181   : > { %v872_v63 = vsel %vm869_vm1, %v871_v56, %v867_v60  ;;  %vm884_vm6 = vcmp.eq.f32.partialorder %v883_v11, 8.507059e+37 }
 0x182   : > { %v719_v0 = vadd.f32 %v1563_v30, %v702_v59  ;;  %1030 = vst.msk [vmem:[%s1573_s30 + $0x28] sm:$0xff] %vm1024_vm5, %v872_v63  ;;  %v886_v14 = vor.u32 1.1754944e-38, %v885_v62 }
 0x183   : > { %v1350_v61 = vpop.eup %1349 }
 0x184   : > { %v1352_v1 = vpop.eup %1351  ;;  %v781_v2 = vadd.f32 1.0, %v1350_v61  ;;  %v1247_v5 = vmul.f32 -1.442695, %v719_v0 }
 0x185   : > { %v1354_v3 = vpop.eup %1353  ;;  %v775_v4 = vadd.f32 1.0, %v1352_v1 }
 0x186   : > { %v1356_v6 = vpop.eup %1355  ;;  %v875_v7 = vmul.f32 %v1354_v3, %v774_v50  ;;  %1357 = vrcp.f32 %v781_v2  ;;  %vm880_vm2 = vweird.f32 %v1354_v3  ;;  %v988_v21 = vand.u32 2147483647, %v781_v2 }
 0x187   : > { %1359 = vrcp.f32 %v775_v4  ;;  %v782_v9 = vadd.f32 1.0, %v1356_v6  ;;  %vm881_vm4 = vmor %vm879_vm3, %vm880_vm2  ;;  %v990_v23 = vand.u32 2147483648, %v781_v2  ;;  %v900_v25 = vand.u32 2147483648, %v775_v4 }
 0x188   : > { %v876_v8 = vsub.f32 1.0, %v875_v7  ;;  %1361 = vpow2.f32 %v1247_v5  ;;  %vm984_vm7 = vweird.f32 %v781_v2  ;;  %v898_v31 = vand.u32 2147483647, %v775_v4 }
 0x189   : > { %1363 = vrcp.f32 %v782_v9  ;;  %vm989_vm10 = vcmp.eq.f32.partialorder %v988_v21, 8.507059e+37  ;;  %vm894_vm11 = vweird.f32 %v775_v4  ;;  %v991_v35 = vor.u32 1.1754944e-38, %v990_v23 }
 0x18a   : > { %v877_v10 = vmul.f32 %v1354_v3, %v876_v8  ;;  %v901_v38 = vor.u32 1.1754944e-38, %v900_v25  ;;  %v1005_v40 = vand.u32 2147483648, %v782_v9  ;;  %v1003_v36 = vand.u32 2147483647, %v782_v9 }
 0x18b   : > { %vm899_vm15 = vcmp.eq.f32.partialorder %v898_v31, 8.507059e+37  ;;  %vm999_vm0 = vweird.f32 %v782_v9 }
 0x18c   : > { %v1358_v30 = vpop.eup %1357  ;;  %v878_v12 = vadd.f32 %v1354_v3, %v877_v10  ;;  %v1006_v46 = vor.u32 1.1754944e-38, %v1005_v40  ;;  %vm1004_vm2 = vcmp.eq.f32.partialorder %v1003_v36, 8.507059e+37 }
 0x18d   : > { %v1360_v13 = vpop.eup %1359  ;;  %v980_v15 = vmul.f32 %v1358_v30, %v781_v2  ;;  %vm985_vm8 = vweird.f32 %v1358_v30 }
 0x18e   : > { %v882_v16 = vsel %vm881_vm4, %v1354_v3, %v878_v12  ;;  %v890_v17 = vmul.f32 %v1360_v13, %v775_v4  ;;  %v1362_v18 = vpop.eup %1361  ;;  %vm895_vm9 = vweird.f32 %v1360_v13  ;;  %vm986_vm12 = vmor %vm984_vm7, %vm985_vm8 }
 0x18f   : > { %v887_v19 = vsel %vm884_vm6, %v886_v14, %v882_v16  ;;  %v981_v20 = vsub.f32 1.0, %v980_v15  ;;  %v1364_v22 = vpop.eup %1363  ;;  %v783_v26 = vadd.f32 1.0, %v1362_v18  ;;  %vm896_vm13 = vmor %vm894_vm11, %vm895_vm9 }
 0x190   : > { %1031 = vst.msk [vmem:[%s1573_s30 + $0x30] sm:$0xff] %vm1024_vm5, %v887_v19  ;;  %v891_v24 = vsub.f32 1.0, %v890_v17  ;;  %v995_v28 = vmul.f32 %v1364_v22, %v782_v9  ;;  %vm1000_vm14 = vweird.f32 %v1364_v22 }
 0x191   : > { %v982_v27 = vmul.f32 %v1358_v30, %v981_v20  ;;  %1365 = vrcp.f32 %v783_v26  ;;  %vm1001_vm1 = vmor %vm999_vm0, %vm1000_vm14  ;;  %v1020_v51 = vand.u32 2147483648, %v783_v26  ;;  %v1018_v53 = vand.u32 2147483647, %v783_v26 }
 0x192   : > { %v892_v29 = vmul.f32 %v1360_v13, %v891_v24  ;;  %v996_v33 = vsub.f32 1.0, %v995_v28  ;;  %vm1014_vm4 = vweird.f32 %v783_v26 }
 0x193   : > { %v983_v32 = vadd.f32 %v1358_v30, %v982_v27  ;;  %v1021_v55 = vor.u32 1.1754944e-38, %v1020_v51  ;;  %vm1019_vm7 = vcmp.eq.f32.partialorder %v1018_v53, 8.507059e+37 }
 0x194   : > { %v893_v37 = vadd.f32 %v1360_v13, %v892_v29  ;;  %v997_v39 = vmul.f32 %v1364_v22, %v996_v33 }
 0x195   : > { %v987_v34 = vsel %vm986_vm12, %v1358_v30, %v983_v32 }
 0x196   : > { %v992_v41 = vsel %vm989_vm10, %v991_v35, %v987_v34  ;;  %v897_v42 = vsel %vm896_vm13, %v1360_v13, %v893_v37  ;;  %v998_v44 = vadd.f32 %v1364_v22, %v997_v39 }
 0x197   : > { %1038 = vst.msk [vmem:[%s1573_s30 + $0x68] sm:$0xff] %vm1024_vm5, %v992_v41  ;;  %v902_v43 = vsel %vm899_vm15, %v901_v38, %v897_v42  ;;  %v1366_v45 = vpop.eup %1365 }
 0x198   : > { %1032 = vst.msk [vmem:[%s1573_s30 + $0x38] sm:$0xff] %vm1024_vm5, %v902_v43  ;;  %v1002_v47 = vsel %vm1001_vm1, %v1364_v22, %v998_v44  ;;  %v1010_v48 = vmul.f32 %v1366_v45, %v783_v26  ;;  %vm1015_vm3 = vweird.f32 %v1366_v45 }
 0x199   : > { %v1007_v49 = vsel %vm1004_vm2, %v1006_v46, %v1002_v47  ;;  %vm1016_vm6 = vmor %vm1014_vm4, %vm1015_vm3 }
 0x19a   : > { %1039 = vst.msk [vmem:[%s1573_s30 + $0x70] sm:$0xff] %vm1024_vm5, %v1007_v49  ;;  %v1011_v50 = vsub.f32 1.0, %v1010_v48 }
 0x19c   : > { %v1012_v52 = vmul.f32 %v1366_v45, %v1011_v50 }
 0x19e   : > { %v1013_v54 = vadd.f32 %v1366_v45, %v1012_v52 }
 0x1a0   : > { %v1017_v57 = vsel %vm1016_vm6, %v1366_v45, %v1013_v54 }
 0x1a1   : > { %v1022_v58 = vsel %vm1019_vm7, %v1021_v55, %v1017_v57 }
 0x1a2   : > { %1040 = vst.msk [vmem:[%s1573_s30 + $0x78] sm:$0xff] %vm1024_vm5, %v1022_v58 }
 0x1a3 PF: > { %s14_s15 = sadd.s32 1, %s1373_s15  }
 0x1a4   : > { %p11_p4 = scmp.ge.s32.totalorder %s14_s15, 4  }
 0x1a6   :  { %13 = sbr.rel (!%p11_p4) target bundleno = 1 (0x1), region = 69 }

</bundles_post_ra>
